<compile_context>
chip_gen: v7x
topology: tpu7x:2x2x1
jax: 0.10.0
libtpu: 0.0.40
codegen_flags: <defaults>
</compile_context>

<pallas_src>
import jax
import jax.numpy as jnp
import numpy as np
from jax.experimental import pallas as pl
from jax.experimental.pallas import tpu as pltpu


def _round_up(a, b):
    return (a + b - 1) // b * b


def _make_repa_kernel(dot_dtype):
    def _repa_kernel(g_ref, nw_ref, e_ref, wt_ref, b_ref, o_ref):
        # g_ref : (TN, 75*C)   gathered neighbour features, layout [t, j, c]
        # nw_ref: (TN, 75)     raw barycentric weights (compact)
        # e_ref : (75, 75*C)   static 0/1 expansion matrix (grid-invariant)
        # wt_ref: (75*C, OUT_P) linear weight with the j-reduction folded in
        # b_ref : (1, OUT_P)   bias (grid-invariant)
        # Rebuild the interleaved per-tap weights on the MXU instead of
        # streaming a C-expanded weight slab from HBM (kernel is HBM-bound).
        w_full = jnp.dot(nw_ref[...], e_ref[...],
                         preferred_element_type=jnp.float32)
        s = g_ref[...] * w_full
        acc = jnp.dot(s.astype(dot_dtype), wt_ref[...],
                      preferred_element_type=jnp.float32)
        o_ref[...] = (acc + b_ref[...]).astype(o_ref.dtype)

    return _repa_kernel


def repa_conv_forward(x, neigh_indices, neigh_weights, lin_w, lin_b,
                      *, tile_n=512, dot_dtype=jnp.bfloat16):
    """Forward pass of repa_conv_layer.

    x:              (N, C)       float32
    neigh_indices:  (N, 75)      int32, 1-based (as in the PyTorch module)
    neigh_weights:  (N, 25, 3)   float32
    lin_w:          (OUT, 25*C)  float32   (nn.Linear weight)
    lin_b:          (OUT,)       float32   (nn.Linear bias)
    returns:        (N, OUT)     float32
    """
    N, C = x.shape
    OUT = lin_w.shape[0]
    K75 = 75 * C
    K75_l = _round_up(K75, 128)
    OUT_P = _round_up(OUT, 128)              # lane-dense output slab

    # ---- node tile: multiple of 8 sublanes, shrunk for tiny N and for VMEM
    tile = _round_up(min(tile_n, _round_up(N, 8)), 8)
    budget = 44 << 20                        # headroom under v7x's 64 MiB VMEM
    fixed = (2 * _round_up(75, 8) * K75_l * 4        # E (worst-case buffering)
             + 2 * _round_up(K75, 16) * OUT_P * 4    # wt (counted as f32)
             + 2 * 8 * OUT_P * 4)                    # bias
    per_row = (2 * K75_l            # gathered slab (double-buffered)
               + 2 * 128            # nw
               + 2 * OUT_P          # out
               + 3 * K75_l) * 4     # in-kernel f32 temporaries
    max_rows = max((budget - fixed) // per_row, 8)
    tile = max(min(tile, max_rows // 8 * 8), 8)
    N_P = _round_up(N, tile)

    # ---- glue: gather x rows -> one contiguous lane-dense slab (N, 75*C)
    idx = neigh_indices.reshape(-1).astype(jnp.int32) - 1
    g = x[idx].reshape(N, K75).astype(jnp.float32)
    g = jnp.pad(g, ((0, N_P - N), (0, 0)))

    # ---- compact barycentric weights: only 75 floats / node streamed
    nw_flat = neigh_weights.reshape(N, 75).astype(jnp.float32)
    nw_flat = jnp.pad(nw_flat, ((0, N_P - N), (0, 0)))

    # ---- static 0/1 expansion matrix reproducing PyTorch's np.tile interleave
    #      W_full[n, (3t+j)*C + c] = nw[n, 3t + (j*C + c) % 3]
    p = np.arange(75)
    t, j = p // 3, p % 3
    c = np.arange(C)
    cols = (p[:, None] * C + c[None, :]).ravel()
    rows = (3 * t[:, None] + (j[:, None] * C + c[None, :]) % 3).ravel()
    e_np = np.zeros((75, K75), dtype=np.float32)
    e_np[rows, cols] = 1.0
    e_mat = jnp.asarray(e_np)

    # ---- linear weight with the sum-over-j folded in, lane-dense padded
    #      wt75[(3t+j)*C + c, o] = lin_w[o, t*C + c]
    wtT = lin_w.T.astype(jnp.float32).reshape(25, 1, C, OUT)
    wt75 = jnp.broadcast_to(wtT, (25, 3, C, OUT)).reshape(K75, OUT)
    wt = jnp.zeros((K75, OUT_P), dtype=dot_dtype)
    wt = wt.at[:, :OUT].set(wt75.astype(dot_dtype))
    b2 = jnp.zeros((1, OUT_P), dtype=jnp.float32)
    b2 = b2.at[:, :OUT].set(lin_b.astype(jnp.float32))

    vmem_limit = int(min(max(fixed + per_row * tile, 32 << 20), 60 << 20))

    grid = (N_P // tile,)
    out = pl.pallas_call(
        _make_repa_kernel(dot_dtype),
        out_shape=jax.ShapeDtypeStruct((N_P, OUT_P), jnp.float32),
        grid=grid,
        in_specs=[
            pl.BlockSpec((tile, K75), lambda i: (i, 0)),    # gathered feats
            pl.BlockSpec((tile, 75), lambda i: (i, 0)),     # barycentric w
            pl.BlockSpec((75, K75), lambda i: (0, 0)),      # E     (constant)
            pl.BlockSpec((K75, OUT_P), lambda i: (0, 0)),   # wt    (constant)
            pl.BlockSpec((1, OUT_P), lambda i: (0, 0)),     # bias  (constant)
        ],
        out_specs=pl.BlockSpec((tile, OUT_P), lambda i: (i, 0)),
        compiler_params=pltpu.CompilerParams(
            dimension_semantics=("parallel",),
            vmem_limit_bytes=vmem_limit),
    )(g, nw_flat, e_mat, wt, b2)

    return out[:N, :OUT]


def _reference(x, neigh_indices, neigh_weights, lin_w, lin_b):
    N, C = x.shape
    idx = neigh_indices.reshape(-1) - 1
    mat = x[idx].reshape(N, 25, 3, C)
    nw_exp = jnp.reshape(jnp.tile(neigh_weights, C), (N, 25, 3, C)) \
                .astype(jnp.float32)
    s = jnp.sum(mat * nw_exp, axis=2).reshape(N, 25 * C)
    return s @ lin_w.T + lin_b


if __name__ == "__main__":
    key = jax.random.PRNGKey(0)
    # level-2 icosahedron node count (not a tile multiple -> exercises padding)
    N, C, OUT = 162, 4, 32

    k_x, k_idx, k_nw, k_w, k_b = jax.random.split(key, 5)
    x = jax.random.normal(k_x, (N, C), dtype=jnp.float32)
    # 1-based neighbour indices, 25 taps x 3 interpolation neighbours per node
    neigh_indices = jax.random.randint(k_idx, (N, 75), 1, N + 1,
                                       dtype=jnp.int32)
    neigh_weights = jax.random.uniform(k_nw, (N, 25, 3), dtype=jnp.float32)
    # deterministic synthetic nn.Linear(25*C, OUT) parameters
    lin_w = 0.1 * jax.random.normal(k_w, (OUT, 25 * C), dtype=jnp.float32)
    lin_b = 0.1 * jax.random.normal(k_b, (OUT,), dtype=jnp.float32)

    ref = jax.block_until_ready(
        _reference(x, neigh_indices, neigh_weights, lin_w, lin_b))

    # exact-math path (f32 operands at the MXU): tight check
    out_f32 = repa_conv_forward(x, neigh_indices, neigh_weights, lin_w, lin_b,
                                dot_dtype=jnp.float32)
    out_f32 = jax.block_until_ready(out_f32)
    np.testing.assert_allclose(np.asarray(out_f32), np.asarray(ref),
                               rtol=1e-4, atol=1e-4)

    # default fast path (bf16 operands at the MXU, f32 accumulation)
    out_bf16 = repa_conv_forward(x, neigh_indices, neigh_weights, lin_w, lin_b)
    out_bf16 = jax.block_until_ready(out_bf16)
    np.testing.assert_allclose(np.asarray(out_bf16), np.asarray(ref),
                               rtol=5e-2, atol=5e-2)

    print("KERNEL_OK")
</pallas_src>

<mosaic_0001>
module attributes {stable_mosaic.version = 11 : i64} {
  func.func @_repa_kernel(%arg0: i32, %arg1: memref<168x300xf32, #tpu.memory_space<vmem>>, %arg2: memref<168x75xf32, #tpu.memory_space<vmem>>, %arg3: memref<75x300xf32, #tpu.memory_space<vmem>>, %arg4: memref<300x128xf32, #tpu.memory_space<vmem>>, %arg5: memref<1x128xf32, #tpu.memory_space<vmem>>, %arg6: memref<168x128xf32, #tpu.memory_space<vmem>>) attributes {dimension_semantics = [#tpu.dimension_semantics<parallel>], iteration_bounds = array<i64: 1>, scalar_prefetch = 0 : i64, scratch_operands = 0 : i64, tpu.core_type = #tpu.core_type<tc>, window_params = [{transform_indices = @transform_0, window_bounds = array<i64: 168, 300>}, {transform_indices = @transform_1, window_bounds = array<i64: 168, 75>}, {pipeline_mode = #tpu.pipeline_mode<synchronous>, transform_indices = @transform_2, window_bounds = array<i64: 75, 300>}, {pipeline_mode = #tpu.pipeline_mode<synchronous>, transform_indices = @transform_3, window_bounds = array<i64: 300, 128>}, {pipeline_mode = #tpu.pipeline_mode<synchronous>, transform_indices = @transform_4, window_bounds = array<i64: 1, 128>}, {transform_indices = @transform_5, window_bounds = array<i64: 168, 128>}]} {
    %c0 = arith.constant 0 : index
    %c0_0 = arith.constant 0 : index
    %0 = vector.load %arg2[%c0, %c0_0] : memref<168x75xf32, #tpu.memory_space<vmem>>, vector<168x75xf32>
    %c0_1 = arith.constant 0 : index
    %c0_2 = arith.constant 0 : index
    %1 = vector.load %arg3[%c0_1, %c0_2] : memref<75x300xf32, #tpu.memory_space<vmem>>, vector<75x300xf32>
    %cst = arith.constant dense<0.000000e+00> : vector<168x300xf32>
    %2 = tpu.matmul %0, %1, %cst {dimension_numbers = #tpu.dot_dimension_numbers<[1], [0], [0], [1], [0, 0, 1, 1], [], []>} : vector<168x75xf32>, vector<75x300xf32>, vector<168x300xf32> -> vector<168x300xf32>
    %c0_3 = arith.constant 0 : index
    %c0_4 = arith.constant 0 : index
    %3 = vector.load %arg1[%c0_3, %c0_4] : memref<168x300xf32, #tpu.memory_space<vmem>>, vector<168x300xf32>
    %4 = arith.mulf %3, %2 : vector<168x300xf32>
    %c0_5 = arith.constant 0 : index
    %c0_6 = arith.constant 0 : index
    %5 = vector.load %arg4[%c0_5, %c0_6] : memref<300x128xf32, #tpu.memory_space<vmem>>, vector<300x128xf32>
    %cst_7 = arith.constant dense<0.000000e+00> : vector<168x128xf32>
    %6 = tpu.matmul %4, %5, %cst_7 {dimension_numbers = #tpu.dot_dimension_numbers<[1], [0], [0], [1], [0, 0, 1, 1], [], []>} : vector<168x300xf32>, vector<300x128xf32>, vector<168x128xf32> -> vector<168x128xf32>
    %c0_8 = arith.constant 0 : index
    %c0_9 = arith.constant 0 : index
    %7 = vector.load %arg5[%c0_8, %c0_9] : memref<1x128xf32, #tpu.memory_space<vmem>>, vector<1x128xf32>
    %8 = vector.broadcast %7 : vector<1x128xf32> to vector<168x128xf32>
    %9 = arith.addf %6, %8 : vector<168x128xf32>
    %c0_10 = arith.constant 0 : index
    %c0_11 = arith.constant 0 : index
    %10 = vector.load %arg6[%c0_10, %c0_11] : memref<168x128xf32, #tpu.memory_space<vmem>>, vector<168x128xf32>
    tpu.vector_store %arg6[%c0_10, %c0_11], %9 {strides = array<i32>} : memref<168x128xf32, #tpu.memory_space<vmem>>, vector<168x128xf32>,
    return
  }
  func.func @transform_0(%arg0: i32) -> (i32, i32) {
    %c0_i32 = arith.constant 0 : i32
    %c0_i32_0 = arith.constant 0 : i32
    return %arg0, %c0_i32 : i32, i32
  }
  func.func @transform_1(%arg0: i32) -> (i32, i32) {
    %c0_i32 = arith.constant 0 : i32
    %c0_i32_0 = arith.constant 0 : i32
    return %arg0, %c0_i32 : i32, i32
  }
  func.func @transform_2(%arg0: i32) -> (i32, i32) {
    %c0_i32 = arith.constant 0 : i32
    %c0_i32_0 = arith.constant 0 : i32
    %c0_i32_1 = arith.constant 0 : i32
    return %c0_i32, %c0_i32_0 : i32, i32
  }
  func.func @transform_3(%arg0: i32) -> (i32, i32) {
    %c0_i32 = arith.constant 0 : i32
    %c0_i32_0 = arith.constant 0 : i32
    %c0_i32_1 = arith.constant 0 : i32
    return %c0_i32, %c0_i32_0 : i32, i32
  }
  func.func @transform_4(%arg0: i32) -> (i32, i32) {
    %c0_i32 = arith.constant 0 : i32
    %c0_i32_0 = arith.constant 0 : i32
    %c0_i32_1 = arith.constant 0 : i32
    return %c0_i32, %c0_i32_0 : i32, i32
  }
  func.func @transform_5(%arg0: i32) -> (i32, i32) {
    %c0_i32 = arith.constant 0 : i32
    %c0_i32_0 = arith.constant 0 : i32
    return %arg0, %c0_i32 : i32, i32
  }
}

</mosaic_0001>

<bundles_post_ra>
// kernel: tpu_custom_call.1
= control target key start
LH: loop header
LB: loop body
LE: loop exit
PB: predicated region body
PF: predicated region fallthrough
CT: control target
= control target key end

     0   :  { %10 = vsyncpa [#allocation3], 0  ;;  %s2142_s0 = inlined_call_operand.hbm [shape: f32[168,300], index: 0, kind: input, shape index: {}]   ;;  %s2143_s1 = inlined_call_operand.vmem [shape: f32[168,75], index: 1, kind: input, shape index: {}]   ;;  %s2144_s2 = inlined_call_operand.hbm [shape: f32[75,300], index: 2, kind: input, shape index: {}]   ;;  %s2145_s3 = inlined_call_operand.vmem [shape: f32[300,128], index: 3, kind: input, shape index: {}]   ;;  %s2146_s4 = inlined_call_operand.vmem [shape: f32[1,128], index: 4, kind: input, shape index: {}]   ;;  %s2147_s5 = inlined_call_operand.hbm [shape: f32[168,128], index: 5, kind: output, shape index: {}]  }
   0x1   :  { %11 = vsyncpa [#allocation6], 0 }
   0x2   :  { %12 = vsyncpa [#allocation4], 0  ;;  %s1658_s18 = smov [#allocation2]   ;;  %s1586_s22 = scalar_lea.hbm %s2142_s0, 8064 }
   0x3   :  { %s18_s19 = sshll.u32 %s1658_s18, 4  ;;  %p1587_p0 = scmp.ne.s32.totalorder %s2142_s0, %s1586_s22  ;;  %s19_s19 = int_to_ptr.vmem [resolvable:$true] %s18_s19 }
   0x4   :  { %p1590_p1 = scmp.lt.u32.totalorder %s1586_s22, %s2142_s0 }
   0x6   :  { %p1592_p2 = pnand %p1590_p1, %p1587_p0 }
   0x8   :  { %1595 = shalt.err (!%p1592_p2)
}
   0x9   :  { %s1596_s27 = scalar_lea.vmem %s19_s19, 8064  ;;  %p1601_p4 = scmp.lt.s32.totalorder %s19_s19, %s19_s19 }
   0xa   :  { %p1597_p3 = scmp.ne.s32.totalorder %s19_s19, %s1596_s27  ;;  %p1602_p5 = scmp.lt.s32.totalorder %s1596_s27, %s1596_s27 }
   0xc   :  { %p1603_p6 = por %p1602_p5, %p1601_p4 }
   0xe   :  { %p1604_p7 = pnand %p1603_p6, %p1597_p3 }
  0x10   :  { %1607 = shalt.err (!%p1604_p7)
}
  0x11   :  { %s1659_s28 = smov 384   ;;  %s1660_s29 = smov 24  }
  0x12   :  { %24 = dma.hbm_to_vmem [thread:$0]  %s2142_s0, 8064, %s19_s19, [#allocation3], %s1659_s28, %s1659_s28, %s1660_s29  }
  0x13   :  { %s1661_s7 = smov [#allocation5]   ;;  %s1608_s11 = scalar_lea.hbm %s2144_s2, 3840 }
  0x14   :  { %s32_s8 = sshll.u32 %s1661_s7, 4  ;;  %p1609_p8 = scmp.ne.s32.totalorder %s2144_s2, %s1608_s11  ;;  %s33_s8 = int_to_ptr.vmem [resolvable:$true] %s32_s8 }
  0x15   :  { %p1612_p9 = scmp.lt.u32.totalorder %s1608_s11, %s2144_s2 }
  0x17   :  { %p1614_p10 = pnand %p1612_p9, %p1609_p8 }
  0x19   :  { %1617 = shalt.err (!%p1614_p10)
}
  0x1a   :  { %s1618_s16 = scalar_lea.vmem %s33_s8, 3840  ;;  %p1623_p12 = scmp.lt.s32.totalorder %s33_s8, %s33_s8 }
  0x1b   :  { %p1619_p11 = scmp.ne.s32.totalorder %s33_s8, %s1618_s16  ;;  %p1624_p13 = scmp.lt.s32.totalorder %s1618_s16, %s1618_s16 }
  0x1d   :  { %p1625_p0 = por %p1624_p13, %p1623_p12 }
  0x1f   :  { %p1626_p1 = pnand %p1625_p0, %p1619_p11 }
  0x21   :  { %1629 = shalt.err (!%p1626_p1)
}
  0x22   :  { %38 = dma.hbm_to_vmem [thread:$0]  %s2144_s2, 3840, %s33_s8, [#allocation6], %s1659_s28, %s1659_s28, %s1660_s29  }
  0x23   :  { %1652 = dma.done.wait [#allocation3], 8064  }
  0x24   :  { %1653 = vsyncadd [#allocation3], 4294959232 }
  0x25   :  { %1654 = dma.done.wait [#allocation6], 3840  }
  0x26   :  { %1655 = vsyncadd [#allocation6], 4294963456  ;;  %v1662_v0 = vmov 0.0|0.0   ;;  %v1663_v1 = vmov 0.0   ;;  %vm1664_vm0 = vmmov 0   ;;  %v71_v2 = vld [vmem:[#allocation5 + $0x8] sm:$0xff] }
  0x27   :  { %1459 = vmatprep.subr.bf16.mxu1 %v1662_v0  ;;  %238 = vmatprep.mubr.f32.mxu0 %v1663_v1  ;;  %v74_v3 = vld [vmem:[#allocation5 + $0x20] sm:$0xff]  ;;  %v73_v6 = vld [vmem:[#allocation5 + $0x18] sm:$0xff]  ;;  %v80_v8 = vld [vmem:[#allocation5 + $0x50] sm:$0xff]  ;;  %vm164_vm1 = vcmask 1042432   ;;  %vm1665_vm2 = vmmov 1   ;;  %vm100_vm4 = vcmask 613376  }
  0x28   :  { %1299 = vmatprep.mubr.msk.f32.mxu1 %vm1664_vm0, %v1663_v1  ;;  %v70_v4 = vld [vmem:[#allocation5] sm:$0xff]  ;;  %v1437_v5 = vpack.c.bf16 %v74_v3, %v71_v2  ;;  %v77_v7 = vld [vmem:[#allocation5 + $0x38] sm:$0xff]  ;;  %v72_v11 = vld [vmem:[#allocation5 + $0x10] sm:$0xff]  ;;  %vm770_vm5 = vcmask 1043456   ;;  %vm706_vm7 = vcmask 359424  }
  0x29   :  { %v1439_v9 = vpack.c.bf16 %v73_v6, %v70_v4  ;;  %v1441_v10 = vpack.c.bf16 %v80_v8, %v77_v7  ;;  %v75_v12 = vld [vmem:[#allocation5 + $0x28] sm:$0xff]  ;;  %v76_v13 = vld [vmem:[#allocation5 + $0x30] sm:$0xff]  ;;  %v86_v17 = vld [vmem:[#allocation5 + $0x80] sm:$0xff] }
  0x2a   :  { %1438 = vmatprep.subr.bf16.mxu0 %v1437_v5  ;;  %v1460_v14 = vpack.c.bf16 %v75_v12, %v72_v11  ;;  %v79_v15 = vld [vmem:[#allocation5 + $0x48] sm:$0xff]  ;;  %v78_v19 = vld [vmem:[#allocation5 + $0x40] sm:$0xff]  ;;  %v81_v20 = vld [vmem:[#allocation5 + $0x58] sm:$0xff] }
  0x2b   :  { %v83_v16 = vld [vmem:[#allocation5 + $0x68] sm:$0xff]  ;;  %1440 = vmatpush1.bf16.msra.mxu0 %v1439_v9  ;;  %v1443_v18 = vpack.c.bf16 %v79_v15, %v76_v13  ;;  %v1463_v22 = vpack.c.bf16 %v81_v20, %v78_v19  ;;  %v82_v23 = vld [vmem:[#allocation5 + $0x60] sm:$0xff]  ;;  %v85_v24 = vld [vmem:[#allocation5 + $0x78] sm:$0xff] }
  0x2c   :  { %1442 = vmatprep.subr.bf16.mxu0 %v1441_v10  ;;  %1461 = vmatpush3.bf16.msra.mxu1 %v1460_v14  ;;  %v1445_v21 = vpack.c.bf16 %v86_v17, %v83_v16  ;;  %v89_v25 = vld [vmem:[#allocation5 + $0x98] sm:$0xff]  ;;  %v92_v26 = vld [vmem:[#allocation5 + $0xb0] sm:$0xff]  ;;  %v87_v28 = vld [vmem:[#allocation5 + $0x88] sm:$0xff]  ;;  %v1447_v29 = vpack.c.bf16 %v85_v24, %v82_v23 }
  0x2d   :  { %1462 = vmatprep.subr.bf16.mxu1 %v1662_v0  ;;  %v84_v27 = vld [vmem:[#allocation5 + $0x70] sm:$0xff]  ;;  %v1449_v30 = vpack.c.bf16 %v92_v26, %v89_v25  ;;  %v91_v33 = vld [vmem:[#allocation5 + $0xa8] sm:$0xff]  ;;  %v98_v35 = vld [vmem:[#allocation5 + $0xe0] sm:$0x7] }
  0x2e   :  { %v1466_v31 = vpack.c.bf16 %v87_v28, %v84_v27  ;;  %v88_v32 = vld [vmem:[#allocation5 + $0x90] sm:$0xff]  ;;  %v95_v34 = vld [vmem:[#allocation5 + $0xc8] sm:$0xff]  ;;  %v90_v36 = vld [vmem:[#allocation5 + $0xa0] sm:$0xff] }
  0x2f   :  { %1444 = vmatpush1.bf16.msra.mxu0 %v1443_v18  ;;  %v93_v37 = vld [vmem:[#allocation5 + $0xb8] sm:$0xff]  ;;  %v1451_v38 = vpack.c.bf16 %v91_v33, %v88_v32  ;;  %v1453_v39 = vpack.c.bf16 %v98_v35, %v95_v34  ;;  %v94_v41 = vld [vmem:[#allocation5 + $0xc0] sm:$0xff]  ;;  %vm1731_vm3 = vmpackc.low %vm164_vm1, %vm1665_vm2 }
  0x30   :  { %1446 = vmatprep.subr.bf16.mxu0 %v1445_v21  ;;  %1464 = vmatpush3.bf16.msra.mxu1 %v1463_v22  ;;  %v1469_v40 = vpack.c.bf16 %v93_v37, %v90_v36  ;;  %v97_v42 = vld [vmem:[#allocation5 + $0xd8] sm:$0x7]  ;;  %v96_v44 = vld [vmem:[#allocation5 + $0xd0] sm:$0xff]  ;;  %v99_v45 = vld [vmem:[#allocation5 + $0xe8] sm:$0x7] }
  0x31   :  { %1465 = vmatprep.subr.bf16.mxu1 %v1662_v0  ;;  %v1456_v46 = vpack.c.bf16 %v97_v42, %v94_v41  ;;  %v1472_v47 = vpack.c.bf16 %v99_v45, %v96_v44  ;;  %v661_v48 = vld [vmem:[%s2145_s3] sm:$0xff]  ;;  %v662_v49 = vld [vmem:[%s2145_s3 + $0x8] sm:$0xff]  ;;  %v663_v55 = vld [vmem:[%s2145_s3 + $0x10] sm:$0xff] }
  0x32   :  { %v693_v50 = vld [vmem:[%s2145_s3 + $0x100] sm:$0xff]  ;;  %v694_v51 = vld [vmem:[%s2145_s3 + $0x108] sm:$0xff]  ;;  %v1476_v53 = vpack.c.bf16 %v662_v49, %v661_v48  ;;  %v664_v56 = vld [vmem:[%s2145_s3 + $0x18] sm:$0xff] }
  0x33   :  { %1448 = vmatpush1.bf16.msra.mxu0 %v1447_v29  ;;  %v49_v52 = vld [vmem:[%s2143_s1] sm:$0xff]  ;;  %v1524_v54 = vpack.c.bf16 %v694_v51, %v693_v50  ;;  %v695_v57 = vld [vmem:[%s2145_s3 + $0x110] sm:$0xff]  ;;  %v696_v58 = vld [vmem:[%s2145_s3 + $0x118] sm:$0xff]  ;;  %v1479_v60 = vpack.c.bf16 %v664_v56, %v663_v55 }
  0x34   :  { %1450 = vmatprep.subr.bf16.mxu0 %v1449_v30  ;;  %1467 = vmatpush3.bf16.msra.mxu1 %v1466_v31  ;;  %v50_v59 = vld [vmem:[%s2143_s1 + $0x8] sm:$0xff]  ;;  %v665_v61 = vld [vmem:[%s2145_s3 + $0x20] sm:$0xff]  ;;  %v1527_v63 = vpack.c.bf16 %v696_v58, %v695_v57  ;;  %v51_v4 = vld [vmem:[%s2143_s1 + $0x10] sm:$0xff] }
  0x35   :  { %1468 = vmatprep.subr.bf16.mxu1 %v1662_v0  ;;  %v666_v62 = vld [vmem:[%s2145_s3 + $0x28] sm:$0xff]  ;;  %v697_v2 = vld [vmem:[%s2145_s3 + $0x120] sm:$0xff]  ;;  %v667_v6 = vld [vmem:[%s2145_s3 + $0x30] sm:$0xff] }
  0x36   :  { %v698_v3 = vld [vmem:[%s2145_s3 + $0x128] sm:$0xf]  ;;  %v1482_v5 = vpack.c.bf16 %v666_v62, %v665_v61  ;;  %v668_v7 = vld [vmem:[%s2145_s3 + $0x38] sm:$0xff]  ;;  %vm1531_vm6 = vmpackc.low %vm770_vm5, %vm1665_vm2 }
  0x37   :  { %1452 = vmatpush1.bf16.msra.mxu0 %v1451_v38  ;;  %v1530_v8 = vpack.c.bf16 %v698_v3, %v697_v2  ;;  %v52_v9 = vld [vmem:[%s2143_s1 + $0x18] sm:$0xff]  ;;  %v1485_v10 = vpack.c.bf16 %v668_v7, %v667_v6  ;;  %v669_v11 = vld [vmem:[%s2145_s3 + $0x40] sm:$0xff]  ;;  %v670_v12 = vld [vmem:[%s2145_s3 + $0x48] sm:$0xff] }
  0x38   :  { %1455 = vmatprep.subr.msk.bf16.mxu0 %vm1731_vm3, %v1453_v39  ;;  %1470 = vmatpush3.bf16.msra.mxu1 %v1469_v40  ;;  %v53_v13 = vld [vmem:[%s2143_s1 + $0x20] sm:$0xff]  ;;  %v1488_v14 = vpack.c.bf16 %v670_v12, %v669_v11  ;;  %v671_v15 = vld [vmem:[%s2145_s3 + $0x50] sm:$0xff]  ;;  %v672_v16 = vld [vmem:[%s2145_s3 + $0x58] sm:$0xff] }
  0x39   :  { %1471 = vmatprep.subr.bf16.mxu1 %v1662_v0  ;;  %v54_v17 = vld [vmem:[%s2143_s1 + $0x28] sm:$0xff]  ;;  %v1491_v18 = vpack.c.bf16 %v672_v16, %v671_v15  ;;  %v673_v19 = vld [vmem:[%s2145_s3 + $0x60] sm:$0xff]  ;;  %v55_v21 = vld [vmem:[%s2143_s1 + $0x30] sm:$0xff] }
  0x3a   :  { %v674_v20 = vld [vmem:[%s2145_s3 + $0x68] sm:$0xff]  ;;  %v675_v23 = vld [vmem:[%s2145_s3 + $0x70] sm:$0xff]  ;;  %v676_v24 = vld [vmem:[%s2145_s3 + $0x78] sm:$0xff] }
  0x3b   :  { %1458 = vmatpush1.bf16.msk.msra.mxu0 %vm1731_vm3, %v1456_v46  ;;  %v1494_v22 = vpack.c.bf16 %v674_v20, %v673_v19  ;;  %v56_v25 = vld [vmem:[%s2143_s1 + $0x38] sm:$0xff]  ;;  %v1497_v26 = vpack.c.bf16 %v676_v24, %v675_v23  ;;  %v677_v27 = vld [vmem:[%s2145_s3 + $0x80] sm:$0xff]  ;;  %v678_v28 = vld [vmem:[%s2145_s3 + $0x88] sm:$0xff] }
  0x3c   :  { %1474 = vmatpush3.bf16.msk.msra.mxu1 %vm1731_vm3, %v1472_v47  ;;  %1523 = vmatprep.subr.bf16.mxu0 %v1662_v0  ;;  %v57_v29 = vld [vmem:[%s2143_s1 + $0x40] sm:$0xff]  ;;  %v1500_v30 = vpack.c.bf16 %v678_v28, %v677_v27  ;;  %v679_v31 = vld [vmem:[%s2145_s3 + $0x90] sm:$0xff]  ;;  %v680_v32 = vld [vmem:[%s2145_s3 + $0x98] sm:$0xff] }
  0x3d   :  { %1475 = vmatprep.subr.bf16.mxu1 %v1662_v0  ;;  %v58_v33 = vld [vmem:[%s2143_s1 + $0x48] sm:$0xff]  ;;  %v1503_v34 = vpack.c.bf16 %v680_v32, %v679_v31  ;;  %v681_v35 = vld [vmem:[%s2145_s3 + $0xa0] sm:$0xff]  ;;  %v59_v37 = vld [vmem:[%s2143_s1 + $0x50] sm:$0xff] }
  0x3e   :  { %1155 = vmatmul.mubr.msk.f32.vlgmr.msra.gmra.mrb[0].mxu0 %vm100_vm4, %v49_v52  ;;  %v682_v36 = vld [vmem:[%s2145_s3 + $0xa8] sm:$0xff]  ;;  %v683_v39 = vld [vmem:[%s2145_s3 + $0xb0] sm:$0xff]  ;;  %v684_v40 = vld [vmem:[%s2145_s3 + $0xb8] sm:$0xff] }
  0x3f   :  { %244 = vmatprep.mubr.f32.mxu0 %v1663_v1  ;;  %1300 = vmatmul.mubr.msk.f32.vlgmr.msra.gmra.mrb[0].mxu1 %vm100_vm4, %v49_v52  ;;  %v1506_v38 = vpack.c.bf16 %v682_v36, %v681_v35  ;;  %v60_v41 = vld [vmem:[%s2143_s1 + $0x58] sm:$0xff]  ;;  %v1509_v42 = vpack.c.bf16 %v684_v40, %v683_v39  ;;  %v685_v43 = vld [vmem:[%s2145_s3 + $0xc0] sm:$0xff]  ;;  %v686_v44 = vld [vmem:[%s2145_s3 + $0xc8] sm:$0xff] }
  0x40   :  { %1302 = vmatprep.mubr.msk.f32.mxu1 %vm1664_vm0, %v1663_v1  ;;  %1477 = vmatpush1.bf16.msra.mxu1 %v1476_v53  ;;  %v61_v45 = vld [vmem:[%s2143_s1 + $0x60] sm:$0xff]  ;;  %v1512_v46 = vpack.c.bf16 %v686_v44, %v685_v43  ;;  %v687_v47 = vld [vmem:[%s2145_s3 + $0xd0] sm:$0xff]  ;;  %v688_v48 = vld [vmem:[%s2145_s3 + $0xd8] sm:$0xff] }
  0x41   :  { %1525 = vmatpush3.bf16.msra.mxu0 %v1524_v54  ;;  %1478 = vmatprep.subr.bf16.mxu1 %v1662_v0  ;;  %v62_v49 = vld [vmem:[%s2143_s1 + $0x68] sm:$0xff]  ;;  %v1515_v50 = vpack.c.bf16 %v688_v48, %v687_v47  ;;  %v689_v51 = vld [vmem:[%s2145_s3 + $0xe0] sm:$0xff]  ;;  %v63_v53 = vld [vmem:[%s2143_s1 + $0x70] sm:$0xff] }
  0x42   :  { %1156 = vmatmul.mubr.msk.f32.gmra.mrb[2].mxu0 %vm100_vm4, %v50_v59  ;;  %1526 = vmatprep.subr.bf16.mxu0 %v1662_v0  ;;  %v690_v52 = vld [vmem:[%s2145_s3 + $0xe8] sm:$0xff]  ;;  %v64_v55 = vld [vmem:[%s2143_s1 + $0x78] sm:$0xff]  ;;  %v65_v56 = vld [vmem:[%s2143_s1 + $0x80] sm:$0xff] }
  0x43   :  { %250 = vmatprep.mubr.f32.mxu0 %v1663_v1  ;;  %1303 = vmatmul.mubr.msk.f32.gmra.mrb[2].mxu1 %vm100_vm4, %v50_v59  ;;  %v1518_v54 = vpack.c.bf16 %v690_v52, %v689_v51  ;;  %v67_v57 = vld [vmem:[%s2143_s1 + $0x90] sm:$0xff]  ;;  %v68_v58 = vld [vmem:[%s2143_s1 + $0x98] sm:$0xff]  ;;  %v69_v59 = vld [vmem:[%s2143_s1 + $0xa0] sm:$0xff] }
  0x44   :  { %1305 = vmatprep.mubr.msk.f32.mxu1 %vm1664_vm0, %v1663_v1  ;;  %1480 = vmatpush1.bf16.msra.mxu1 %v1479_v60  ;;  %v691_v60 = vld [vmem:[%s2145_s3 + $0xf0] sm:$0xff]  ;;  %v692_v61 = vld [vmem:[%s2145_s3 + $0xf8] sm:$0xff]  ;;  %v539_v11 = vld [vmem:[#allocation2 + $0x20] sm:$0xff] }
  0x45   :  { %1481 = vmatprep.subr.bf16.mxu1 %v1662_v0  ;;  %1528 = vmatpush3.bf16.msra.mxu0 %v1527_v63  ;;  %v1521_v62 = vpack.c.bf16 %v692_v61, %v691_v60  ;;  %v536_v63 = vld [vmem:[#allocation2 + $0x8] sm:$0xff]  ;;  %v537_v2 = vld [vmem:[#allocation2 + $0x10] sm:$0xff]  ;;  %v546_v32 = vld [vmem:[#allocation2 + $0x58] sm:$0xff] }
  0x46   :  { %1157 = vmatmul.mubr.msk.f32.gmra.mrb[4].mxu0 %vm100_vm4, %v51_v4  ;;  %1529 = vmatprep.subr.bf16.mxu0 %v1662_v0  ;;  %v540_v12 = vld [vmem:[#allocation2 + $0x28] sm:$0xff]  ;;  %v541_v24 = vld [vmem:[#allocation2 + $0x30] sm:$0xff]  ;;  %v547_v44 = vld [vmem:[#allocation2 + $0x60] sm:$0xff] }
  0x47   :  { %256 = vmatprep.mubr.f32.mxu0 %v1663_v1  ;;  %1306 = vmatmul.mubr.msk.f32.gmra.mrb[4].mxu1 %vm100_vm4, %v51_v4  ;;  %v535_v4 = vld [vmem:[#allocation2] sm:$0xff]  ;;  %v545_v31 = vld [vmem:[#allocation2 + $0x50] sm:$0xff]  ;;  %v552_v52 = vld [vmem:[#allocation2 + $0x88] sm:$0xff] }
  0x48   :  { %1308 = vmatprep.mubr.msk.f32.mxu1 %vm1664_vm0, %v1663_v1  ;;  %1483 = vmatpush1.bf16.msra.mxu1 %v1482_v5  ;;  %v551_v51 = vld [vmem:[#allocation2 + $0x80] sm:$0xff]  ;;  %v554_v60 = vld [vmem:[#allocation2 + $0x98] sm:$0xff] }
  0x49   :  { %1484 = vmatprep.subr.bf16.mxu1 %v1662_v0  ;;  %1532 = vmatpush3.bf16.msk.msra.mxu0 %vm1531_vm6, %v1530_v8  ;;  %v555_v61 = vld [vmem:[#allocation2 + $0xa0] sm:$0xff] }
  0x4a   :  { %1158 = vmatmul.mubr.msk.f32.gmra.mrb[6].mxu0 %vm100_vm4, %v52_v9 }
  0x4b   :  { %262 = vmatprep.mubr.f32.mxu0 %v1663_v1  ;;  %1309 = vmatmul.mubr.msk.f32.gmra.mrb[6].mxu1 %vm100_vm4, %v52_v9 }
  0x4c   :  { %1311 = vmatprep.mubr.msk.f32.mxu1 %vm1664_vm0, %v1663_v1  ;;  %1486 = vmatpush1.bf16.msra.mxu1 %v1485_v10 }
  0x4d   :  { %1487 = vmatprep.subr.bf16.mxu1 %v1662_v0 }
  0x4e   :  { %1159 = vmatmul.mubr.msk.f32.gmra.mrb[8].mxu0 %vm100_vm4, %v53_v13 }
  0x4f   :  { %268 = vmatprep.mubr.f32.mxu0 %v1663_v1  ;;  %1312 = vmatmul.mubr.msk.f32.gmra.mrb[8].mxu1 %vm100_vm4, %v53_v13 }
  0x50   :  { %1314 = vmatprep.mubr.msk.f32.mxu1 %vm1664_vm0, %v1663_v1  ;;  %1489 = vmatpush1.bf16.msra.mxu1 %v1488_v14  ;;  %v538_v14 = vld [vmem:[#allocation2 + $0x18] sm:$0xff] }
  0x51   :  { %1490 = vmatprep.subr.bf16.mxu1 %v1662_v0 }
  0x52   :  { %1160 = vmatmul.mubr.msk.f32.gmra.mrb[10].mxu0 %vm100_vm4, %v54_v17 }
  0x53   :  { %274 = vmatprep.mubr.f32.mxu0 %v1663_v1  ;;  %1315 = vmatmul.mubr.msk.f32.gmra.mrb[10].mxu1 %vm100_vm4, %v54_v17 }
  0x54   :  { %1317 = vmatprep.mubr.msk.f32.mxu1 %vm1664_vm0, %v1663_v1  ;;  %1492 = vmatpush1.bf16.msra.mxu1 %v1491_v18 }
  0x55   :  { %1493 = vmatprep.subr.bf16.mxu1 %v1662_v0 }
  0x56   :  { %1161 = vmatmul.mubr.msk.f32.gmra.mrb[12].mxu0 %vm100_vm4, %v55_v21 }
  0x57   :  { %280 = vmatprep.mubr.f32.mxu0 %v1663_v1  ;;  %1318 = vmatmul.mubr.msk.f32.gmra.mrb[12].mxu1 %vm100_vm4, %v55_v21  ;;  %v542_v21 = vld [vmem:[#allocation2 + $0x38] sm:$0xff] }
  0x58   :  { %1320 = vmatprep.mubr.msk.f32.mxu1 %vm1664_vm0, %v1663_v1  ;;  %1495 = vmatpush1.bf16.msra.mxu1 %v1494_v22  ;;  %v543_v22 = vld [vmem:[#allocation2 + $0x40] sm:$0xff] }
  0x59   :  { %1496 = vmatprep.subr.bf16.mxu1 %v1662_v0 }
  0x5a   :  { %1162 = vmatmul.mubr.msk.f32.gmra.mrb[14].mxu0 %vm100_vm4, %v56_v25 }
  0x5b   :  { %286 = vmatprep.mubr.f32.mxu0 %v1663_v1  ;;  %1321 = vmatmul.mubr.msk.f32.gmra.mrb[14].mxu1 %vm100_vm4, %v56_v25 }
  0x5c   :  { %1323 = vmatprep.mubr.msk.f32.mxu1 %vm1664_vm0, %v1663_v1  ;;  %1498 = vmatpush1.bf16.msra.mxu1 %v1497_v26 }
  0x5d   :  { %1499 = vmatprep.subr.bf16.mxu1 %v1662_v0 }
  0x5e   :  { %1163 = vmatmul.mubr.msk.f32.gmra.mrb[16].mxu0 %vm100_vm4, %v57_v29 }
  0x5f   :  { %292 = vmatprep.mubr.f32.mxu0 %v1663_v1  ;;  %1324 = vmatmul.mubr.msk.f32.gmra.mrb[16].mxu1 %vm100_vm4, %v57_v29 }
  0x60   :  { %1326 = vmatprep.mubr.msk.f32.mxu1 %vm1664_vm0, %v1663_v1  ;;  %1501 = vmatpush1.bf16.msra.mxu1 %v1500_v30 }
  0x61   :  { %1502 = vmatprep.subr.bf16.mxu1 %v1662_v0 }
  0x62   :  { %1164 = vmatmul.mubr.msk.f32.gmra.mrb[18].mxu0 %vm100_vm4, %v58_v33 }
  0x63   :  { %298 = vmatprep.mubr.f32.mxu0 %v1663_v1  ;;  %1327 = vmatmul.mubr.msk.f32.gmra.mrb[18].mxu1 %vm100_vm4, %v58_v33 }
  0x64   :  { %1329 = vmatprep.mubr.msk.f32.mxu1 %vm1664_vm0, %v1663_v1  ;;  %1504 = vmatpush1.bf16.msra.mxu1 %v1503_v34  ;;  %v544_v34 = vld [vmem:[#allocation2 + $0x48] sm:$0xff] }
  0x65   :  { %1505 = vmatprep.subr.bf16.mxu1 %v1662_v0 }
  0x66   :  { %1165 = vmatmul.mubr.msk.f32.gmra.mrb[20].mxu0 %vm100_vm4, %v59_v37 }
  0x67   :  { %304 = vmatprep.mubr.f32.mxu0 %v1663_v1  ;;  %1330 = vmatmul.mubr.msk.f32.gmra.mrb[20].mxu1 %vm100_vm4, %v59_v37 }
  0x68   :  { %1332 = vmatprep.mubr.msk.f32.mxu1 %vm1664_vm0, %v1663_v1  ;;  %1507 = vmatpush1.bf16.msra.mxu1 %v1506_v38 }
  0x69   :  { %1508 = vmatprep.subr.bf16.mxu1 %v1662_v0 }
  0x6a   :  { %1166 = vmatmul.mubr.msk.f32.gmra.mrb[22].mxu0 %vm100_vm4, %v60_v41 }
  0x6b   :  { %310 = vmatprep.mubr.f32.mxu0 %v1663_v1  ;;  %1333 = vmatmul.mubr.msk.f32.gmra.mrb[22].mxu1 %vm100_vm4, %v60_v41  ;;  %v548_v41 = vld [vmem:[#allocation2 + $0x68] sm:$0xff] }
  0x6c   :  { %1335 = vmatprep.mubr.msk.f32.mxu1 %vm1664_vm0, %v1663_v1  ;;  %1510 = vmatpush1.bf16.msra.mxu1 %v1509_v42  ;;  %v549_v42 = vld [vmem:[#allocation2 + $0x70] sm:$0xff] }
  0x6d   :  { %1511 = vmatprep.subr.bf16.mxu1 %v1662_v0 }
  0x6e   :  { %1167 = vmatmul.mubr.msk.f32.gmra.mrb[24].mxu0 %vm100_vm4, %v61_v45 }
  0x6f   :  { %316 = vmatprep.mubr.f32.mxu0 %v1663_v1  ;;  %1336 = vmatmul.mubr.msk.f32.gmra.mrb[24].mxu1 %vm100_vm4, %v61_v45 }
  0x70   :  { %1338 = vmatprep.mubr.msk.f32.mxu1 %vm1664_vm0, %v1663_v1  ;;  %1513 = vmatpush1.bf16.msra.mxu1 %v1512_v46 }
  0x71   :  { %1514 = vmatprep.subr.bf16.mxu1 %v1662_v0 }
  0x72   :  { %1168 = vmatmul.mubr.msk.f32.gmra.mrb[26].mxu0 %vm100_vm4, %v62_v49 }
  0x73   :  { %322 = vmatprep.mubr.f32.mxu0 %v1663_v1  ;;  %1339 = vmatmul.mubr.msk.f32.gmra.mrb[26].mxu1 %vm100_vm4, %v62_v49 }
  0x74   :  { %1341 = vmatprep.mubr.msk.f32.mxu1 %vm1664_vm0, %v1663_v1  ;;  %1516 = vmatpush1.bf16.msra.mxu1 %v1515_v50 }
  0x75   :  { %1517 = vmatprep.subr.bf16.mxu1 %v1662_v0 }
  0x76   :  { %1169 = vmatmul.mubr.msk.f32.gmra.mrb[28].mxu0 %vm100_vm4, %v63_v53 }
  0x77   :  { %328 = vmatprep.mubr.f32.mxu0 %v1663_v1  ;;  %1342 = vmatmul.mubr.msk.f32.gmra.mrb[28].mxu1 %vm100_vm4, %v63_v53 }
  0x78   :  { %1344 = vmatprep.mubr.msk.f32.mxu1 %vm1664_vm0, %v1663_v1  ;;  %1519 = vmatpush1.bf16.msra.mxu1 %v1518_v54  ;;  %v550_v54 = vld [vmem:[#allocation2 + $0x78] sm:$0xff] }
  0x79   :  { %1520 = vmatprep.subr.bf16.mxu1 %v1662_v0  ;;  %v66_v0 = vld [vmem:[%s2143_s1 + $0x88] sm:$0xff] }
  0x7a   :  { %1170 = vmatmul.mubr.msk.f32.gmra.mrb[30].mxu0 %vm100_vm4, %v64_v55 }
  0x7b   :  { %334 = vmatprep.mubr.f32.mxu0 %v1663_v1  ;;  %1345 = vmatmul.mubr.msk.f32.gmra.mrb[30].mxu1 %vm100_vm4, %v64_v55 }
  0x7c   :  { %1347 = vmatprep.mubr.msk.f32.mxu1 %vm1664_vm0, %v1663_v1  ;;  %1522 = vmatpush1.bf16.msra.mxu1 %v1521_v62 }
  0x7e   :  { %1171 = vmatmul.mubr.msk.f32.gmra.mrb[32].mxu0 %vm100_vm4, %v65_v56 }
  0x7f   :  { %340 = vmatprep.mubr.f32.mxu0 %v1663_v1  ;;  %1348 = vmatmul.mubr.msk.f32.gmra.mrb[32].mxu1 %vm100_vm4, %v65_v56 }
  0x80   :  { %1350 = vmatprep.mubr.msk.f32.mxu1 %vm1664_vm0, %v1663_v1 }
  0x82   :  { %1172 = vmatmul.mubr.msk.f32.gmra.mrb[34].mxu0 %vm100_vm4, %v66_v0 }
  0x83   :  { %346 = vmatprep.mubr.f32.mxu0 %v1663_v1  ;;  %1351 = vmatmul.mubr.msk.f32.gmra.mrb[34].mxu1 %vm100_vm4, %v66_v0 }
  0x84   :  { %1353 = vmatprep.mubr.msk.f32.mxu1 %vm1664_vm0, %v1663_v1 }
  0x86   :  { %1173 = vmatmul.mubr.msk.f32.gmra.mrb[36].mxu0 %vm100_vm4, %v67_v57 }
  0x87   :  { %352 = vmatprep.mubr.f32.mxu0 %v1663_v1  ;;  %1354 = vmatmul.mubr.msk.f32.gmra.mrb[36].mxu1 %vm100_vm4, %v67_v57 }
  0x88   :  { %1356 = vmatprep.mubr.msk.f32.mxu1 %vm1664_vm0, %v1663_v1 }
  0x8a   :  { %1174 = vmatmul.mubr.msk.f32.gmra.mrb[38].mxu0 %vm100_vm4, %v68_v58 }
  0x8b   :  { %358 = vmatprep.mubr.f32.mxu0 %v1663_v1  ;;  %1357 = vmatmul.mubr.msk.f32.gmra.mrb[38].mxu1 %vm100_vm4, %v68_v58 }
  0x8c   :  { %1359 = vmatprep.mubr.msk.f32.mxu1 %vm1664_vm0, %v1663_v1 }
  0x8e   :  { %1175 = vmatmul.mubr.msk.f32.gmra.mrb[40].mxu0 %vm100_vm4, %v69_v59 }
  0x8f   :  { %1360 = vmatmul.mubr.msk.f32.gmra.mrb[40].mxu1 %vm100_vm4, %v69_v59  ;;  %1374 = vmatprep.mubr.msk.f32.mxu0 %vm1664_vm0, %v1663_v1 }
 0x111   :  { %v240_v3 = vpop.f32.mrb[0].mxu0 }
 0x112   :  { %v242_v5 = vpop.f32.mrb[1].mxu0  ;;  %v431_v6 = vpop.f32.mrb[0].mxu1  ;;  %v598_v10 = vmul.f32 %v535_v4, %v240_v3 }
 0x113   :  { %v599_v7 = vmul.f32 %v536_v63, %v242_v5  ;;  %v600_v8 = vmul.f32 %v537_v2, %v431_v6  ;;  %v1301_v9 = vpop.f32.mrb[1].mxu1  ;;  %v553_v63 = vld [vmem:[#allocation2 + $0x90] sm:$0xff] }
 0x114   :  { %v558_v9 = vld [vmem:[#allocation2 + $0xb8] sm:$0xff] }
 0x115   :  { %v246_v13 = vpop.f32.mrb[2].mxu0  ;;  %838 = vmatprep.mubr.f32.mxu1 %v599_v7  ;;  %1375 = vmatmul.mubr.msk.f32.vlgmr.msra.gmra.mrb[42].mxu0 %vm706_vm7, %v600_v8  ;;  %v557_v8 = vld [vmem:[#allocation2 + $0xb0] sm:$0xff] }
 0x116   :  { %v248_v15 = vpop.f32.mrb[3].mxu0  ;;  %839 = vmatmul.mubr.f32.vlgmr.msra.gmra.mrb[42].mxu1 %v598_v10  ;;  %v436_v16 = vpop.f32.mrb[2].mxu1  ;;  %1377 = vmatprep.mubr.msk.f32.mxu0 %vm1664_vm0, %v1663_v1  ;;  %v601_v20 = vmul.f32 %v538_v14, %v246_v13 }
 0x117   :  { %v602_v17 = vmul.f32 %v539_v11, %v248_v15  ;;  %v603_v18 = vmul.f32 %v540_v12, %v436_v16  ;;  %v1304_v19 = vpop.f32.mrb[3].mxu1  ;;  %v556_v11 = vld [vmem:[#allocation2 + $0xa8] sm:$0xff] }
 0x118   :  { %v561_v19 = vld [vmem:[#allocation2 + $0xd0] sm:$0xff] }
 0x119   :  { %v252_v23 = vpop.f32.mrb[4].mxu0  ;;  %843 = vmatprep.mubr.f32.mxu1 %v602_v17  ;;  %1378 = vmatmul.mubr.msk.f32.gmra.mrb[44].mxu0 %vm706_vm7, %v603_v18  ;;  %v560_v18 = vld [vmem:[#allocation2 + $0xc8] sm:$0xff] }
 0x11a   :  { %v254_v25 = vpop.f32.mrb[5].mxu0  ;;  %844 = vmatmul.mubr.f32.gmra.mrb[44].mxu1 %v601_v20  ;;  %v441_v26 = vpop.f32.mrb[4].mxu1  ;;  %1380 = vmatprep.mubr.msk.f32.mxu0 %vm1664_vm0, %v1663_v1  ;;  %v604_v30 = vmul.f32 %v541_v24, %v252_v23 }
 0x11b   :  { %v605_v27 = vmul.f32 %v542_v21, %v254_v25  ;;  %v606_v28 = vmul.f32 %v543_v22, %v441_v26  ;;  %v1307_v29 = vpop.f32.mrb[5].mxu1  ;;  %v559_v21 = vld [vmem:[#allocation2 + $0xc0] sm:$0xff] }
 0x11c   :  { %v564_v29 = vld [vmem:[#allocation2 + $0xe8] sm:$0xff] }
 0x11d   :  { %v258_v33 = vpop.f32.mrb[6].mxu0  ;;  %848 = vmatprep.mubr.f32.mxu1 %v605_v27  ;;  %1381 = vmatmul.mubr.msk.f32.gmra.mrb[46].mxu0 %vm706_vm7, %v606_v28  ;;  %v563_v28 = vld [vmem:[#allocation2 + $0xe0] sm:$0xff] }
 0x11e   :  { %v260_v35 = vpop.f32.mrb[7].mxu0  ;;  %849 = vmatmul.mubr.f32.gmra.mrb[46].mxu1 %v604_v30  ;;  %v446_v36 = vpop.f32.mrb[6].mxu1  ;;  %1383 = vmatprep.mubr.msk.f32.mxu0 %vm1664_vm0, %v1663_v1  ;;  %v607_v40 = vmul.f32 %v544_v34, %v258_v33 }
 0x11f   :  { %v608_v37 = vmul.f32 %v545_v31, %v260_v35  ;;  %v609_v38 = vmul.f32 %v546_v32, %v446_v36  ;;  %v1310_v39 = vpop.f32.mrb[7].mxu1  ;;  %v562_v31 = vld [vmem:[#allocation2 + $0xd8] sm:$0xff] }
 0x120   :  { %v567_v39 = vld [vmem:[#allocation2 + $0x100] sm:$0xff] }
 0x121   :  { %v264_v43 = vpop.f32.mrb[8].mxu0  ;;  %853 = vmatprep.mubr.f32.mxu1 %v608_v37  ;;  %1384 = vmatmul.mubr.msk.f32.gmra.mrb[48].mxu0 %vm706_vm7, %v609_v38  ;;  %v566_v38 = vld [vmem:[#allocation2 + $0xf8] sm:$0xff] }
 0x122   :  { %v266_v45 = vpop.f32.mrb[9].mxu0  ;;  %854 = vmatmul.mubr.f32.gmra.mrb[48].mxu1 %v607_v40  ;;  %v451_v46 = vpop.f32.mrb[8].mxu1  ;;  %1386 = vmatprep.mubr.msk.f32.mxu0 %vm1664_vm0, %v1663_v1  ;;  %v610_v50 = vmul.f32 %v547_v44, %v264_v43 }
 0x123   :  { %v611_v47 = vmul.f32 %v548_v41, %v266_v45  ;;  %v612_v48 = vmul.f32 %v549_v42, %v451_v46  ;;  %v1313_v49 = vpop.f32.mrb[9].mxu1  ;;  %v565_v41 = vld [vmem:[#allocation2 + $0xf0] sm:$0xff] }
 0x124   :  { %v570_v49 = vld [vmem:[#allocation2 + $0x118] sm:$0xff] }
 0x125   :  { %v270_v53 = vpop.f32.mrb[10].mxu0  ;;  %858 = vmatprep.mubr.f32.mxu1 %v611_v47  ;;  %1387 = vmatmul.mubr.msk.f32.gmra.mrb[50].mxu0 %vm706_vm7, %v612_v48  ;;  %v569_v48 = vld [vmem:[#allocation2 + $0x110] sm:$0xff] }
 0x126   :  { %v272_v55 = vpop.f32.mrb[11].mxu0  ;;  %859 = vmatmul.mubr.f32.gmra.mrb[50].mxu1 %v610_v50  ;;  %v456_v56 = vpop.f32.mrb[10].mxu1  ;;  %1389 = vmatprep.mubr.msk.f32.mxu0 %vm1664_vm0, %v1663_v1  ;;  %v613_v59 = vmul.f32 %v550_v54, %v270_v53 }
 0x127   :  { %v614_v0 = vmul.f32 %v551_v51, %v272_v55  ;;  %v615_v57 = vmul.f32 %v552_v52, %v456_v56  ;;  %v1316_v58 = vpop.f32.mrb[11].mxu1  ;;  %v568_v51 = vld [vmem:[#allocation2 + $0x108] sm:$0xff] }
 0x128   :  { %v573_v58 = vld [vmem:[#allocation2 + $0x130] sm:$0xff] }
 0x129   :  { %v276_v62 = vpop.f32.mrb[12].mxu0  ;;  %863 = vmatprep.mubr.f32.mxu1 %v614_v0  ;;  %1390 = vmatmul.mubr.msk.f32.gmra.mrb[52].mxu0 %vm706_vm7, %v615_v57  ;;  %v572_v57 = vld [vmem:[#allocation2 + $0x128] sm:$0xff] }
 0x12a   :  { %v278_v2 = vpop.f32.mrb[13].mxu0  ;;  %864 = vmatmul.mubr.f32.gmra.mrb[52].mxu1 %v613_v59  ;;  %v461_v3 = vpop.f32.mrb[12].mxu1  ;;  %1392 = vmatprep.mubr.msk.f32.mxu0 %vm1664_vm0, %v1663_v1  ;;  %v616_v7 = vmul.f32 %v553_v63, %v276_v62 }
 0x12b   :  { %v617_v4 = vmul.f32 %v554_v60, %v278_v2  ;;  %v618_v5 = vmul.f32 %v555_v61, %v461_v3  ;;  %v1319_v6 = vpop.f32.mrb[13].mxu1  ;;  %v571_v60 = vld [vmem:[#allocation2 + $0x120] sm:$0xff] }
 0x12c   :  { %v576_v6 = vld [vmem:[#allocation2 + $0x148] sm:$0xff] }
 0x12d   :  { %v282_v10 = vpop.f32.mrb[14].mxu0  ;;  %868 = vmatprep.mubr.f32.mxu1 %v617_v4  ;;  %1393 = vmatmul.mubr.msk.f32.gmra.mrb[54].mxu0 %vm706_vm7, %v618_v5  ;;  %v575_v5 = vld [vmem:[#allocation2 + $0x140] sm:$0xff] }
 0x12e   :  { %v284_v12 = vpop.f32.mrb[15].mxu0  ;;  %869 = vmatmul.mubr.f32.gmra.mrb[54].mxu1 %v616_v7  ;;  %v466_v13 = vpop.f32.mrb[14].mxu1  ;;  %1395 = vmatprep.mubr.msk.f32.mxu0 %vm1664_vm0, %v1663_v1  ;;  %v619_v17 = vmul.f32 %v556_v11, %v282_v10 }
 0x12f   :  { %v620_v14 = vmul.f32 %v557_v8, %v284_v12  ;;  %v621_v15 = vmul.f32 %v558_v9, %v466_v13  ;;  %v1322_v16 = vpop.f32.mrb[15].mxu1  ;;  %v574_v8 = vld [vmem:[#allocation2 + $0x138] sm:$0xff] }
 0x130   :  { %v579_v16 = vld [vmem:[#allocation2 + $0x160] sm:$0xff] }
 0x131   :  { %v288_v20 = vpop.f32.mrb[16].mxu0  ;;  %873 = vmatprep.mubr.f32.mxu1 %v620_v14  ;;  %1396 = vmatmul.mubr.msk.f32.gmra.mrb[56].mxu0 %vm706_vm7, %v621_v15  ;;  %v578_v15 = vld [vmem:[#allocation2 + $0x158] sm:$0xff] }
 0x132   :  { %v290_v22 = vpop.f32.mrb[17].mxu0  ;;  %874 = vmatmul.mubr.f32.gmra.mrb[56].mxu1 %v619_v17  ;;  %v471_v23 = vpop.f32.mrb[16].mxu1  ;;  %1398 = vmatprep.mubr.msk.f32.mxu0 %vm1664_vm0, %v1663_v1  ;;  %v622_v27 = vmul.f32 %v559_v21, %v288_v20 }
 0x133   :  { %v623_v24 = vmul.f32 %v560_v18, %v290_v22  ;;  %v624_v25 = vmul.f32 %v561_v19, %v471_v23  ;;  %v1325_v26 = vpop.f32.mrb[17].mxu1  ;;  %v577_v18 = vld [vmem:[#allocation2 + $0x150] sm:$0xff] }
 0x134   :  { %v582_v26 = vld [vmem:[#allocation2 + $0x178] sm:$0xff] }
 0x135   :  { %v294_v30 = vpop.f32.mrb[18].mxu0  ;;  %878 = vmatprep.mubr.f32.mxu1 %v623_v24  ;;  %1399 = vmatmul.mubr.msk.f32.gmra.mrb[58].mxu0 %vm706_vm7, %v624_v25  ;;  %v581_v25 = vld [vmem:[#allocation2 + $0x170] sm:$0xff] }
 0x136   :  { %v296_v32 = vpop.f32.mrb[19].mxu0  ;;  %879 = vmatmul.mubr.f32.gmra.mrb[58].mxu1 %v622_v27  ;;  %v476_v33 = vpop.f32.mrb[18].mxu1  ;;  %1401 = vmatprep.mubr.msk.f32.mxu0 %vm1664_vm0, %v1663_v1  ;;  %v625_v37 = vmul.f32 %v562_v31, %v294_v30 }
 0x137   :  { %v626_v34 = vmul.f32 %v563_v28, %v296_v32  ;;  %v627_v35 = vmul.f32 %v564_v29, %v476_v33  ;;  %v1328_v36 = vpop.f32.mrb[19].mxu1  ;;  %v580_v28 = vld [vmem:[#allocation2 + $0x168] sm:$0xff] }
 0x138   :  { %v585_v36 = vld [vmem:[#allocation2 + $0x190] sm:$0xff] }
 0x139   :  { %v300_v40 = vpop.f32.mrb[20].mxu0  ;;  %883 = vmatprep.mubr.f32.mxu1 %v626_v34  ;;  %1402 = vmatmul.mubr.msk.f32.gmra.mrb[60].mxu0 %vm706_vm7, %v627_v35  ;;  %v584_v35 = vld [vmem:[#allocation2 + $0x188] sm:$0xff] }
 0x13a   :  { %v302_v42 = vpop.f32.mrb[21].mxu0  ;;  %884 = vmatmul.mubr.f32.gmra.mrb[60].mxu1 %v625_v37  ;;  %v481_v43 = vpop.f32.mrb[20].mxu1  ;;  %1404 = vmatprep.mubr.msk.f32.mxu0 %vm1664_vm0, %v1663_v1  ;;  %v628_v47 = vmul.f32 %v565_v41, %v300_v40 }
 0x13b   :  { %v629_v44 = vmul.f32 %v566_v38, %v302_v42  ;;  %v630_v45 = vmul.f32 %v567_v39, %v481_v43  ;;  %v1331_v46 = vpop.f32.mrb[21].mxu1  ;;  %v583_v38 = vld [vmem:[#allocation2 + $0x180] sm:$0xff] }
 0x13c   :  { %v588_v46 = vld [vmem:[#allocation2 + $0x1a8] sm:$0xff] }
 0x13d   :  { %v306_v50 = vpop.f32.mrb[22].mxu0  ;;  %888 = vmatprep.mubr.f32.mxu1 %v629_v44  ;;  %1405 = vmatmul.mubr.msk.f32.gmra.mrb[62].mxu0 %vm706_vm7, %v630_v45  ;;  %v587_v45 = vld [vmem:[#allocation2 + $0x1a0] sm:$0xff] }
 0x13e   :  { %v308_v52 = vpop.f32.mrb[23].mxu0  ;;  %889 = vmatmul.mubr.f32.gmra.mrb[62].mxu1 %v628_v47  ;;  %v486_v53 = vpop.f32.mrb[22].mxu1  ;;  %1407 = vmatprep.mubr.msk.f32.mxu0 %vm1664_vm0, %v1663_v1  ;;  %v631_v0 = vmul.f32 %v568_v51, %v306_v50 }
 0x13f   :  { %v632_v54 = vmul.f32 %v569_v48, %v308_v52  ;;  %v633_v55 = vmul.f32 %v570_v49, %v486_v53  ;;  %v1334_v56 = vpop.f32.mrb[23].mxu1  ;;  %v586_v48 = vld [vmem:[#allocation2 + $0x198] sm:$0xff] }
 0x140   :  { %v591_v56 = vld [vmem:[#allocation2 + $0x1c0] sm:$0xff] }
 0x141   :  { %v312_v59 = vpop.f32.mrb[24].mxu0  ;;  %893 = vmatprep.mubr.f32.mxu1 %v632_v54  ;;  %1408 = vmatmul.mubr.msk.f32.gmra.mrb[64].mxu0 %vm706_vm7, %v633_v55  ;;  %v590_v55 = vld [vmem:[#allocation2 + $0x1b8] sm:$0xff] }
 0x142   :  { %v314_v61 = vpop.f32.mrb[25].mxu0  ;;  %894 = vmatmul.mubr.f32.gmra.mrb[64].mxu1 %v631_v0  ;;  %v491_v62 = vpop.f32.mrb[24].mxu1  ;;  %1410 = vmatprep.mubr.msk.f32.mxu0 %vm1664_vm0, %v1663_v1  ;;  %v634_v4 = vmul.f32 %v571_v60, %v312_v59 }
 0x143   :  { %v635_v63 = vmul.f32 %v572_v57, %v314_v61  ;;  %v636_v2 = vmul.f32 %v573_v58, %v491_v62  ;;  %v1337_v3 = vpop.f32.mrb[25].mxu1  ;;  %v589_v57 = vld [vmem:[#allocation2 + $0x1b0] sm:$0xff] }
 0x144   :  { %v594_v3 = vld [vmem:[#allocation2 + $0x1d8] sm:$0xff] }
 0x145   :  { %v318_v7 = vpop.f32.mrb[26].mxu0  ;;  %898 = vmatprep.mubr.f32.mxu1 %v635_v63  ;;  %1411 = vmatmul.mubr.msk.f32.gmra.mrb[66].mxu0 %vm706_vm7, %v636_v2  ;;  %v593_v2 = vld [vmem:[#allocation2 + $0x1d0] sm:$0xff] }
 0x146   :  { %v320_v9 = vpop.f32.mrb[27].mxu0  ;;  %899 = vmatmul.mubr.f32.gmra.mrb[66].mxu1 %v634_v4  ;;  %v496_v10 = vpop.f32.mrb[26].mxu1  ;;  %1413 = vmatprep.mubr.msk.f32.mxu0 %vm1664_vm0, %v1663_v1  ;;  %v637_v14 = vmul.f32 %v574_v8, %v318_v7 }
 0x147   :  { %v638_v11 = vmul.f32 %v575_v5, %v320_v9  ;;  %v639_v12 = vmul.f32 %v576_v6, %v496_v10  ;;  %v1340_v13 = vpop.f32.mrb[27].mxu1  ;;  %v592_v5 = vld [vmem:[#allocation2 + $0x1c8] sm:$0xff] }
 0x148   :  { %v597_v13 = vld [vmem:[#allocation2 + $0x1f0] sm:$0xff] }
 0x149   :  { %v324_v17 = vpop.f32.mrb[28].mxu0  ;;  %903 = vmatprep.mubr.f32.mxu1 %v638_v11  ;;  %1414 = vmatmul.mubr.msk.f32.gmra.mrb[68].mxu0 %vm706_vm7, %v639_v12  ;;  %v596_v12 = vld [vmem:[#allocation2 + $0x1e8] sm:$0xff] }
 0x14a   :  { %v326_v19 = vpop.f32.mrb[29].mxu0  ;;  %904 = vmatmul.mubr.f32.gmra.mrb[68].mxu1 %v637_v14  ;;  %v501_v20 = vpop.f32.mrb[28].mxu1  ;;  %1416 = vmatprep.mubr.msk.f32.mxu0 %vm1664_vm0, %v1663_v1  ;;  %v640_v24 = vmul.f32 %v577_v18, %v324_v17 }
 0x14b   :  { %v641_v21 = vmul.f32 %v578_v15, %v326_v19  ;;  %v642_v22 = vmul.f32 %v579_v16, %v501_v20  ;;  %v1343_v23 = vpop.f32.mrb[29].mxu1  ;;  %v595_v15 = vld [vmem:[#allocation2 + $0x1e0] sm:$0xff] }
 0x14d   :  { %v330_v27 = vpop.f32.mrb[30].mxu0  ;;  %908 = vmatprep.mubr.f32.mxu1 %v641_v21  ;;  %1417 = vmatmul.mubr.msk.f32.gmra.mrb[70].mxu0 %vm706_vm7, %v642_v22  ;;  %v2107_v22 = vld [vmem:[%s2146_s4] ss:$0 sm:$0xff]  ;;  %s1666_s4 = smov [#allocation7]  }
 0x14e   :  { %v332_v29 = vpop.f32.mrb[31].mxu0  ;;  %909 = vmatmul.mubr.f32.gmra.mrb[70].mxu1 %v640_v24  ;;  %v506_v30 = vpop.f32.mrb[30].mxu1  ;;  %1419 = vmatprep.mubr.msk.f32.mxu0 %vm1664_vm0, %v1663_v1  ;;  %v643_v34 = vmul.f32 %v580_v28, %v330_v27  ;;  %s1140_s27 = sshll.u32 %s1666_s4, 4  ;;  %s1141_s27 = int_to_ptr.vmem [resolvable:$true] %s1140_s27 }
 0x14f   :  { %v644_v31 = vmul.f32 %v581_v25, %v332_v29  ;;  %v645_v32 = vmul.f32 %v582_v26, %v506_v30  ;;  %v1346_v33 = vpop.f32.mrb[31].mxu1  ;;  %s1630_s28 = scalar_lea.vmem %s1141_s27, 2688  ;;  %p1635_p3 = scmp.lt.s32.totalorder %s1141_s27, %s1141_s27 }
 0x150   :  { %p1631_p2 = scmp.ne.s32.totalorder %s1141_s27, %s1630_s28  ;;  %p1636_p4 = scmp.lt.s32.totalorder %s1630_s28, %s1630_s28 }
 0x151   :  { %v336_v37 = vpop.f32.mrb[32].mxu0  ;;  %913 = vmatprep.mubr.f32.mxu1 %v644_v31  ;;  %1420 = vmatmul.mubr.msk.f32.gmra.mrb[72].mxu0 %vm706_vm7, %v645_v32 }
 0x152   :  { %v338_v39 = vpop.f32.mrb[33].mxu0  ;;  %914 = vmatmul.mubr.f32.gmra.mrb[72].mxu1 %v643_v34  ;;  %v511_v40 = vpop.f32.mrb[32].mxu1  ;;  %1422 = vmatprep.mubr.msk.f32.mxu0 %vm1664_vm0, %v1663_v1  ;;  %v646_v44 = vmul.f32 %v583_v38, %v336_v37  ;;  %p1637_p5 = por %p1636_p4, %p1635_p3 }
 0x153   :  { %v647_v41 = vmul.f32 %v584_v35, %v338_v39  ;;  %v648_v42 = vmul.f32 %v585_v36, %v511_v40  ;;  %v1349_v43 = vpop.f32.mrb[33].mxu1 }
 0x154   :  { %p1638_p6 = pnand %p1637_p5, %p1631_p2 }
 0x155   :  { %v342_v47 = vpop.f32.mrb[34].mxu0  ;;  %918 = vmatprep.mubr.f32.mxu1 %v647_v41  ;;  %1423 = vmatmul.mubr.msk.f32.gmra.mrb[74].mxu0 %vm706_vm7, %v648_v42 }
 0x156   :  { %v344_v49 = vpop.f32.mrb[35].mxu0  ;;  %919 = vmatmul.mubr.f32.gmra.mrb[74].mxu1 %v646_v44  ;;  %v516_v50 = vpop.f32.mrb[34].mxu1  ;;  %1425 = vmatprep.mubr.msk.f32.mxu0 %vm1664_vm0, %v1663_v1  ;;  %v649_v54 = vmul.f32 %v586_v48, %v342_v47 }
 0x157   :  { %v650_v51 = vmul.f32 %v587_v45, %v344_v49  ;;  %v651_v52 = vmul.f32 %v588_v46, %v516_v50  ;;  %v1352_v53 = vpop.f32.mrb[35].mxu1 }
 0x159   :  { %v348_v0 = vpop.f32.mrb[36].mxu0  ;;  %923 = vmatprep.mubr.f32.mxu1 %v650_v51  ;;  %1426 = vmatmul.mubr.msk.f32.gmra.mrb[76].mxu0 %vm706_vm7, %v651_v52 }
 0x15a   :  { %v350_v58 = vpop.f32.mrb[37].mxu0  ;;  %924 = vmatmul.mubr.f32.gmra.mrb[76].mxu1 %v649_v54  ;;  %v521_v59 = vpop.f32.mrb[36].mxu1  ;;  %1428 = vmatprep.mubr.msk.f32.mxu0 %vm1664_vm0, %v1663_v1  ;;  %v652_v63 = vmul.f32 %v589_v57, %v348_v0 }
 0x15b   :  { %v653_v60 = vmul.f32 %v590_v55, %v350_v58  ;;  %v654_v61 = vmul.f32 %v591_v56, %v521_v59  ;;  %v1355_v62 = vpop.f32.mrb[37].mxu1 }
 0x15d   :  { %v354_v4 = vpop.f32.mrb[38].mxu0  ;;  %928 = vmatprep.mubr.f32.mxu1 %v653_v60  ;;  %1429 = vmatmul.mubr.msk.f32.gmra.mrb[78].mxu0 %vm706_vm7, %v654_v61 }
 0x15e   :  { %v356_v6 = vpop.f32.mrb[39].mxu0  ;;  %929 = vmatmul.mubr.f32.gmra.mrb[78].mxu1 %v652_v63  ;;  %v526_v7 = vpop.f32.mrb[38].mxu1  ;;  %1431 = vmatprep.mubr.msk.f32.mxu0 %vm1664_vm0, %v1663_v1  ;;  %v655_v11 = vmul.f32 %v592_v5, %v354_v4 }
 0x15f   :  { %v656_v8 = vmul.f32 %v593_v2, %v356_v6  ;;  %v657_v9 = vmul.f32 %v594_v3, %v526_v7  ;;  %v1358_v10 = vpop.f32.mrb[39].mxu1 }
 0x161   :  { %v360_v14 = vpop.f32.mrb[40].mxu0  ;;  %933 = vmatprep.mubr.f32.mxu1 %v656_v8  ;;  %1432 = vmatmul.mubr.msk.f32.gmra.mrb[80].mxu0 %vm706_vm7, %v657_v9 }
 0x162   :  { %v362_v16 = vpop.f32.mrb[41].mxu0  ;;  %934 = vmatmul.mubr.f32.gmra.mrb[80].mxu1 %v655_v11  ;;  %v531_v17 = vpop.f32.mrb[40].mxu1  ;;  %1434 = vmatprep.mubr.msk.f32.mxu0 %vm1664_vm0, %v1663_v1  ;;  %v658_v21 = vmul.f32 %v595_v15, %v360_v14 }
 0x163   :  { %v659_v18 = vmul.f32 %v596_v12, %v362_v16  ;;  %v660_v19 = vmul.f32 %v597_v13, %v531_v17  ;;  %v1361_v20 = vpop.f32.mrb[41].mxu1 }
 0x165   :  { %938 = vmatprep.mubr.f32.mxu1 %v659_v18  ;;  %1435 = vmatmul.mubr.msk.f32.gmra.mrb[82].mxu0 %vm706_vm7, %v660_v19 }
 0x166   :  { %939 = vmatmul.mubr.f32.gmra.mrb[82].mxu1 %v658_v21 }
 0x1e8   :  { %v1010_v23 = vpop.f32.mrb[42].mxu0 }
 0x1e9   :  { %v840_v24 = vpop.f32.mrb[42].mxu1  ;;  %v1376_v25 = vpop.f32.mrb[43].mxu0 }
 0x1ea   :  { %v841_v26 = vadd.f32 %v2107_v22, %v840_v24  ;;  %v842_v27 = vpop.f32.mrb[43].mxu1 }
 0x1ec   :  { %v1011_v1 = vadd.f32 %v1010_v23, %v841_v26  ;;  %v1015_v28 = vpop.f32.mrb[44].mxu0 }
 0x1ed   :  { %v845_v29 = vpop.f32.mrb[44].mxu1  ;;  %v1379_v30 = vpop.f32.mrb[45].mxu0 }
 0x1ee   :  { %1114 = vst [vmem:[#allocation7] sm:$0xff] %v1011_v1  ;;  %v846_v31 = vadd.f32 %v2107_v22, %v845_v29  ;;  %v847_v32 = vpop.f32.mrb[45].mxu1 }
 0x1f0   :  { %v1016_v33 = vadd.f32 %v1015_v28, %v846_v31  ;;  %v1020_v34 = vpop.f32.mrb[46].mxu0 }
 0x1f1   :  { %v850_v35 = vpop.f32.mrb[46].mxu1  ;;  %v1382_v36 = vpop.f32.mrb[47].mxu0 }
 0x1f2   :  { %1115 = vst [vmem:[#allocation7 + $0x8] sm:$0xff] %v1016_v33  ;;  %v851_v37 = vadd.f32 %v2107_v22, %v850_v35  ;;  %v852_v38 = vpop.f32.mrb[47].mxu1 }
 0x1f4   :  { %v1021_v39 = vadd.f32 %v1020_v34, %v851_v37  ;;  %v1025_v40 = vpop.f32.mrb[48].mxu0 }
 0x1f5   :  { %v855_v41 = vpop.f32.mrb[48].mxu1  ;;  %v1385_v42 = vpop.f32.mrb[49].mxu0 }
 0x1f6   :  { %1116 = vst [vmem:[#allocation7 + $0x10] sm:$0xff] %v1021_v39  ;;  %v856_v43 = vadd.f32 %v2107_v22, %v855_v41  ;;  %v857_v44 = vpop.f32.mrb[49].mxu1 }
 0x1f8   :  { %v1026_v45 = vadd.f32 %v1025_v40, %v856_v43  ;;  %v1030_v46 = vpop.f32.mrb[50].mxu0 }
 0x1f9   :  { %v860_v47 = vpop.f32.mrb[50].mxu1  ;;  %v1388_v48 = vpop.f32.mrb[51].mxu0 }
 0x1fa   :  { %1117 = vst [vmem:[#allocation7 + $0x18] sm:$0xff] %v1026_v45  ;;  %v861_v49 = vadd.f32 %v2107_v22, %v860_v47  ;;  %v862_v50 = vpop.f32.mrb[51].mxu1 }
 0x1fc   :  { %v1031_v51 = vadd.f32 %v1030_v46, %v861_v49  ;;  %v1035_v52 = vpop.f32.mrb[52].mxu0 }
 0x1fd   :  { %v865_v53 = vpop.f32.mrb[52].mxu1  ;;  %v1391_v54 = vpop.f32.mrb[53].mxu0 }
 0x1fe   :  { %1118 = vst [vmem:[#allocation7 + $0x20] sm:$0xff] %v1031_v51  ;;  %v866_v55 = vadd.f32 %v2107_v22, %v865_v53  ;;  %v867_v56 = vpop.f32.mrb[53].mxu1 }
 0x200   :  { %v1036_v0 = vadd.f32 %v1035_v52, %v866_v55  ;;  %v1040_v57 = vpop.f32.mrb[54].mxu0 }
 0x201   :  { %v870_v58 = vpop.f32.mrb[54].mxu1  ;;  %v1394_v59 = vpop.f32.mrb[55].mxu0 }
 0x202   :  { %1119 = vst [vmem:[#allocation7 + $0x28] sm:$0xff] %v1036_v0  ;;  %v871_v60 = vadd.f32 %v2107_v22, %v870_v58  ;;  %v872_v61 = vpop.f32.mrb[55].mxu1 }
 0x204   :  { %v1041_v62 = vadd.f32 %v1040_v57, %v871_v60  ;;  %v1045_v63 = vpop.f32.mrb[56].mxu0 }
 0x205   :  { %v875_v2 = vpop.f32.mrb[56].mxu1  ;;  %v1397_v3 = vpop.f32.mrb[57].mxu0 }
 0x206   :  { %1120 = vst [vmem:[#allocation7 + $0x30] sm:$0xff] %v1041_v62  ;;  %v876_v4 = vadd.f32 %v2107_v22, %v875_v2  ;;  %v877_v5 = vpop.f32.mrb[57].mxu1 }
 0x208   :  { %v1046_v6 = vadd.f32 %v1045_v63, %v876_v4  ;;  %v1050_v7 = vpop.f32.mrb[58].mxu0 }
 0x209   :  { %v880_v8 = vpop.f32.mrb[58].mxu1  ;;  %v1400_v9 = vpop.f32.mrb[59].mxu0 }
 0x20a   :  { %1121 = vst [vmem:[#allocation7 + $0x38] sm:$0xff] %v1046_v6  ;;  %v881_v10 = vadd.f32 %v2107_v22, %v880_v8  ;;  %v882_v11 = vpop.f32.mrb[59].mxu1 }
 0x20c   :  { %v1051_v12 = vadd.f32 %v1050_v7, %v881_v10  ;;  %v1055_v13 = vpop.f32.mrb[60].mxu0 }
 0x20d   :  { %v885_v14 = vpop.f32.mrb[60].mxu1  ;;  %v1403_v15 = vpop.f32.mrb[61].mxu0 }
 0x20e   :  { %1122 = vst [vmem:[#allocation7 + $0x40] sm:$0xff] %v1051_v12  ;;  %v886_v16 = vadd.f32 %v2107_v22, %v885_v14  ;;  %v887_v17 = vpop.f32.mrb[61].mxu1 }
 0x210   :  { %v1056_v18 = vadd.f32 %v1055_v13, %v886_v16  ;;  %v1060_v19 = vpop.f32.mrb[62].mxu0 }
 0x211   :  { %v890_v20 = vpop.f32.mrb[62].mxu1  ;;  %v1406_v21 = vpop.f32.mrb[63].mxu0 }
 0x212   :  { %1123 = vst [vmem:[#allocation7 + $0x48] sm:$0xff] %v1056_v18  ;;  %v891_v23 = vadd.f32 %v2107_v22, %v890_v20  ;;  %v892_v24 = vpop.f32.mrb[63].mxu1 }
 0x214   :  { %v1061_v25 = vadd.f32 %v1060_v19, %v891_v23  ;;  %v1065_v26 = vpop.f32.mrb[64].mxu0 }
 0x215   :  { %v895_v27 = vpop.f32.mrb[64].mxu1  ;;  %v1409_v1 = vpop.f32.mrb[65].mxu0 }
 0x216   :  { %1124 = vst [vmem:[#allocation7 + $0x50] sm:$0xff] %v1061_v25  ;;  %v896_v28 = vadd.f32 %v2107_v22, %v895_v27  ;;  %v897_v29 = vpop.f32.mrb[65].mxu1 }
 0x218   :  { %v1066_v30 = vadd.f32 %v1065_v26, %v896_v28  ;;  %v1070_v31 = vpop.f32.mrb[66].mxu0 }
 0x219   :  { %v900_v32 = vpop.f32.mrb[66].mxu1  ;;  %v1412_v33 = vpop.f32.mrb[67].mxu0 }
 0x21a   :  { %1125 = vst [vmem:[#allocation7 + $0x58] sm:$0xff] %v1066_v30  ;;  %v901_v34 = vadd.f32 %v2107_v22, %v900_v32  ;;  %v902_v35 = vpop.f32.mrb[67].mxu1 }
 0x21c   :  { %v1071_v36 = vadd.f32 %v1070_v31, %v901_v34  ;;  %v1075_v37 = vpop.f32.mrb[68].mxu0 }
 0x21d   :  { %v905_v38 = vpop.f32.mrb[68].mxu1  ;;  %v1415_v39 = vpop.f32.mrb[69].mxu0 }
 0x21e   :  { %1126 = vst [vmem:[#allocation7 + $0x60] sm:$0xff] %v1071_v36  ;;  %v906_v40 = vadd.f32 %v2107_v22, %v905_v38  ;;  %v907_v41 = vpop.f32.mrb[69].mxu1 }
 0x220   :  { %v1076_v42 = vadd.f32 %v1075_v37, %v906_v40  ;;  %v1080_v43 = vpop.f32.mrb[70].mxu0 }
 0x221   :  { %v910_v44 = vpop.f32.mrb[70].mxu1  ;;  %v1418_v45 = vpop.f32.mrb[71].mxu0 }
 0x222   :  { %1127 = vst [vmem:[#allocation7 + $0x68] sm:$0xff] %v1076_v42  ;;  %v911_v46 = vadd.f32 %v2107_v22, %v910_v44  ;;  %v912_v47 = vpop.f32.mrb[71].mxu1 }
 0x224   :  { %v1081_v48 = vadd.f32 %v1080_v43, %v911_v46  ;;  %v1085_v49 = vpop.f32.mrb[72].mxu0 }
 0x225   :  { %v915_v50 = vpop.f32.mrb[72].mxu1  ;;  %v1421_v51 = vpop.f32.mrb[73].mxu0 }
 0x226   :  { %1128 = vst [vmem:[#allocation7 + $0x70] sm:$0xff] %v1081_v48  ;;  %v916_v52 = vadd.f32 %v2107_v22, %v915_v50  ;;  %v917_v53 = vpop.f32.mrb[73].mxu1 }
 0x228   :  { %v1086_v54 = vadd.f32 %v1085_v49, %v916_v52  ;;  %v1090_v55 = vpop.f32.mrb[74].mxu0 }
 0x229   :  { %v920_v56 = vpop.f32.mrb[74].mxu1  ;;  %v1424_v0 = vpop.f32.mrb[75].mxu0 }
 0x22a   :  { %1129 = vst [vmem:[#allocation7 + $0x78] sm:$0xff] %v1086_v54  ;;  %v921_v57 = vadd.f32 %v2107_v22, %v920_v56  ;;  %v922_v58 = vpop.f32.mrb[75].mxu1 }
 0x22c   :  { %v1091_v59 = vadd.f32 %v1090_v55, %v921_v57  ;;  %v1095_v60 = vpop.f32.mrb[76].mxu0 }
 0x22d   :  { %v925_v61 = vpop.f32.mrb[76].mxu1  ;;  %v1427_v62 = vpop.f32.mrb[77].mxu0 }
 0x22e   :  { %1130 = vst [vmem:[#allocation7 + $0x80] sm:$0xff] %v1091_v59  ;;  %v926_v63 = vadd.f32 %v2107_v22, %v925_v61  ;;  %v927_v2 = vpop.f32.mrb[77].mxu1 }
 0x230   :  { %v1096_v3 = vadd.f32 %v1095_v60, %v926_v63  ;;  %v1100_v4 = vpop.f32.mrb[78].mxu0 }
 0x231   :  { %v930_v5 = vpop.f32.mrb[78].mxu1  ;;  %v1430_v6 = vpop.f32.mrb[79].mxu0 }
 0x232   :  { %1131 = vst [vmem:[#allocation7 + $0x88] sm:$0xff] %v1096_v3  ;;  %v931_v7 = vadd.f32 %v2107_v22, %v930_v5  ;;  %v932_v8 = vpop.f32.mrb[79].mxu1 }
 0x234   :  { %v1101_v9 = vadd.f32 %v1100_v4, %v931_v7  ;;  %v1105_v10 = vpop.f32.mrb[80].mxu0 }
 0x235   :  { %v935_v11 = vpop.f32.mrb[80].mxu1  ;;  %v1433_v12 = vpop.f32.mrb[81].mxu0 }
 0x236   :  { %1132 = vst [vmem:[#allocation7 + $0x90] sm:$0xff] %v1101_v9  ;;  %v936_v13 = vadd.f32 %v2107_v22, %v935_v11  ;;  %v937_v14 = vpop.f32.mrb[81].mxu1 }
 0x238   :  { %v1106_v15 = vadd.f32 %v1105_v10, %v936_v13  ;;  %v1110_v16 = vpop.f32.mrb[82].mxu0 }
 0x239   :  { %v940_v17 = vpop.f32.mrb[82].mxu1  ;;  %v1436_v18 = vpop.f32.mrb[83].mxu0 }
 0x23a   :  { %1133 = vst [vmem:[#allocation7 + $0x98] sm:$0xff] %v1106_v15  ;;  %v941_v19 = vadd.f32 %v2107_v22, %v940_v17  ;;  %v942_v20 = vpop.f32.mrb[83].mxu1 }
 0x23c   :  { %v1111_v21 = vadd.f32 %v1110_v16, %v941_v19 }
 0x23e   :  { %1134 = vst [vmem:[#allocation7 + $0xa0] sm:$0xff] %v1111_v21 }
 0x23f   :  { %1641 = shalt.err (!%p1638_p6)
}
 0x240   :  { %s1642_s6 = scalar_lea.hbm %s2147_s5, 2688 }
 0x241   :  { %p1643_p7 = scmp.ne.s32.totalorder %s2147_s5, %s1642_s6  ;;  %p1646_p8 = scmp.lt.u32.totalorder %s1642_s6, %s2147_s5 }
 0x243   :  { %p1648_p9 = pnand %p1646_p8, %p1643_p7 }
 0x245   :  { %1651 = shalt.err (!%p1648_p9)
}
 0x246   :  { %s1667_s11 = smov 128   ;;  %s1668_s12 = smov 8  }
 0x247   :  { %1146 = dma.vmem_to_hbm [thread:$0]  %s1141_s27, 2688, %s2147_s5, [#allocation4], %s1667_s11, %s1667_s11, %s1668_s12  }
 0x248   :  { %1656 = dma.done.wait [#allocation4], 2688  }
 0x249   :  { %1657 = vsyncadd [#allocation4], 4294964608 }
 0x24a   :  { %1150 = vsyncpa [#allocation3], 1 }
 0x24b   :  { %1151 = vsyncpa [#allocation6], 1 }
 0x24c   :  { %1152 = vsyncpa [#allocation4], 1 }

</bundles_post_ra>
